<compile_context>
chip_gen: v7x
topology: tpu7x:2x2x1
jax: 0.10.0
libtpu: 0.0.40
codegen_flags: <defaults>
</compile_context>

<pallas_src>
import functools

import jax
import jax.numpy as jnp
from jax.experimental import pallas as pl
from jax.experimental.pallas import tpu as pltpu


def lstm_chunk_kernel(maxlen_ref, len_ref, gx_ref, w_hh_ref, h_out_ref, h_scr, c_scr):
    """Grid = (batch_blocks, time_chunks); one step = one (batch block, time chunk).

    maxlen_ref : (1,)          int32  SMEM scalar-prefetch: max sequence length
    len_ref    : (BB, 1)       int32  sequence lengths (padded rows = 0)
    gx_ref     : (Tc, BB, 4H)  bf16   precomputed x @ W_ih + b for this chunk
    w_hh_ref   : (H, 4H)       bf16
    h_out_ref  : (BB, H)       f32    last valid hidden state (written at final chunk)
    h_scr/c_scr: (BB, H)       f32    recurrent state, persists across chunks
    """
    chunk = pl.program_id(1)
    n_chunks = pl.num_programs(1)
    BB, H = h_scr.shape
    Tc = gx_ref.shape[0]

    @pl.when(chunk == 0)
    def _init():
        h_scr[...] = jnp.zeros_like(h_scr)
        c_scr[...] = jnp.zeros_like(c_scr)

    t0 = chunk * Tc
    max_len = maxlen_ref[0]

    # Skip chunks that lie entirely in the time padding (t0 >= max(lengths)).
    @pl.when(t0 < max_len)
    def _active():
        # Hoist loop invariants (JAX does not CSE broadcasts/loads inside the loop).
        w_hh = w_hh_ref[...]            # (H, 4H) bf16, stays resident in vregs
        lens_rel = len_ref[...] - t0    # (BB, 1)  int32, chunk-relative lengths

        def step(t, carry):
            h, c = carry                # f32 (BB, H)
            # Only the truly serial recurrent term stays in the loop; gx is precomputed.
            gates = gx_ref[t].astype(jnp.float32) + jnp.dot(
                h.astype(w_hh.dtype), w_hh, preferred_element_type=jnp.float32)
            # One sigmoid + one tanh pass over the full (BB, 4H) register (2 EUP passes
            # instead of 4), then cheap static lane slices.  PyTorch gate order: i, f, g, o.
            sig = jax.nn.sigmoid(gates)
            th = jnp.tanh(gates)
            i_g = sig[:, 0 * H:1 * H]
            f_g = sig[:, 1 * H:2 * H]
            g_g = th[:, 2 * H:3 * H]
            o_g = sig[:, 3 * H:4 * H]
            c_new = f_g * c + i_g * g_g
            h_new = o_g * jnp.tanh(c_new)
            # pack_padded_sequence semantics: only advance state while t < length[b]
            valid = lens_rel > t                            # (BB, 1) bool
            return jnp.where(valid, h_new, h), jnp.where(valid, c_new, c)

        h, c = jax.lax.fori_loop(0, Tc, step, (h_scr[...], c_scr[...]),
                                 unroll=min(Tc, 8))
        h_scr[...] = h
        c_scr[...] = c

    @pl.when(chunk == n_chunks - 1)
    def _finalize():
        h_out_ref[...] = h_scr[...]


@functools.partial(jax.jit, static_argnames=("time_chunk",))
def rnn_classifier_forward(sequence, lengths, params, time_chunk=32):
    """sequence: (T, B) int token ids; lengths: (B,). Returns (B,) probabilities."""
    emb_table = params["embedding"]          # (V, E), row 0 is zero (padding_idx=0)
    w_ih = params["w_ih"]                    # (E, 4H)
    w_hh = params["w_hh"]                    # (H, 4H)
    b = params["b"]                          # (1, 4H)  (b_ih + b_hh folded)
    w_fc = params["w_fc"]                    # (H, O)
    b_fc = params["b_fc"]                    # (1, O)

    T, B = sequence.shape
    E = emb_table.shape[1]
    H = w_hh.shape[0]
    G = 4 * H

    # ---- Pad batch to a multiple of 8 sublanes; pad time to a multiple of the chunk.
    B_pad = max(8, ((B + 7) // 8) * 8)
    Tc = max(1, min(time_chunk, T))
    # Keep the double-buffered bf16 gx stream comfortably inside scoped VMEM (v5e: 16 MiB
    # default, v7x: 64 MiB physical).
    while 2 * Tc * B_pad * G * 2 > (8 << 20) and Tc > 8:
        Tc //= 2
    n_chunks = -(-T // Tc)
    T_pad = n_chunks * Tc

    # Split the batch across TensorCores (v7x megacore) when it is large enough.
    n_bb = 2 if (B_pad % 16 == 0) else 1
    BB = B_pad // n_bb

    seq_p = jnp.zeros((T_pad, B_pad), jnp.int32).at[:T, :B].set(
        sequence.astype(jnp.int32))                                # pad token = 0
    len_p = jnp.zeros((B_pad, 1), jnp.int32).at[:B, 0].set(
        lengths.reshape(-1).astype(jnp.int32))                     # pad rows: len 0
    max_len = jnp.max(len_p).astype(jnp.int32).reshape(1)          # scalar prefetch

    # ---- Glue (XLA): embedding gather + hoisted input projection, fully parallel and
    # well-shaped.  The kernel then only runs the serial h @ W_hh recurrence.
    x = emb_table[seq_p]                              # (T_pad, B_pad, E) f32
    gx = x.reshape(T_pad * B_pad, E) @ w_ih + b       # (T_pad*B_pad, 4H) f32, bias folded
    gx = gx.reshape(T_pad, B_pad, G).astype(jnp.bfloat16)

    w_hh_bf16 = w_hh.astype(jnp.bfloat16)

    h_last = pl.pallas_call(
        lstm_chunk_kernel,
        out_shape=jax.ShapeDtypeStruct((B_pad, H), jnp.float32),
        grid_spec=pltpu.PrefetchScalarGridSpec(
            num_scalar_prefetch=1,
            grid=(n_bb, n_chunks),
            in_specs=[
                pl.BlockSpec((BB, 1), lambda bb, c, ml: (bb, 0)),        # lengths
                pl.BlockSpec((Tc, BB, G), lambda bb, c, ml: (c, bb, 0)),  # gx chunk
                pl.BlockSpec((H, G), lambda bb, c, ml: (0, 0)),           # W_hh
            ],
            out_specs=pl.BlockSpec((BB, H), lambda bb, c, ml: (bb, 0)),
            scratch_shapes=[
                pltpu.VMEM((BB, H), jnp.float32),                         # h
                pltpu.VMEM((BB, H), jnp.float32),                         # c
            ],
        ),
        compiler_params=pltpu.CompilerParams(
            dimension_semantics=("parallel", "arbitrary"),   # batch parallel, chunks carry
            vmem_limit_bytes=32 * 1024 * 1024,
        ),
    )(max_len, len_p, gx, w_hh_bf16)

    # ---- Glue: lane-sparse O=1 FC + sigmoid stays in XLA (kernel output is lane-dense h).
    h = h_last[:B]                                    # drop padded batch rows
    logits = h @ w_fc + b_fc
    return jax.nn.sigmoid(logits).reshape(-1)         # torch .squeeze(): (B, 1) -> (B,)


def reference_forward(sequence, lengths, params):
    """Pure-JAX f32 reference of the same forward pass."""
    emb = params["embedding"][sequence]      # (T, B, E)
    T, B, _ = emb.shape
    H = params["w_hh"].shape[0]
    h = jnp.zeros((B, H), jnp.float32)
    c = jnp.zeros((B, H), jnp.float32)
    for t in range(T):
        gates = emb[t] @ params["w_ih"] + h @ params["w_hh"] + params["b"]
        i_g = jax.nn.sigmoid(gates[:, 0 * H:1 * H])
        f_g = jax.nn.sigmoid(gates[:, 1 * H:2 * H])
        g_g = jnp.tanh(gates[:, 2 * H:3 * H])
        o_g = jax.nn.sigmoid(gates[:, 3 * H:4 * H])
        c_new = f_g * c + i_g * g_g
        h_new = o_g * jnp.tanh(c_new)
        valid = (lengths > t).reshape(B, 1)
        h = jnp.where(valid, h_new, h)
        c = jnp.where(valid, c_new, c)
    logits = h @ params["w_fc"] + params["b_fc"]
    return jax.nn.sigmoid(logits).reshape(-1)


def init_params(key, num_embeddings, embedding_dim, hidden_size, output_dim):
    ks = jax.random.split(key, 6)
    scale = 0.1
    emb = scale * jax.random.normal(ks[0], (num_embeddings, embedding_dim), jnp.float32)
    emb = emb.at[0].set(0.0)                                  # padding_idx=0
    return {
        "embedding": emb,
        "w_ih": scale * jax.random.normal(ks[1], (embedding_dim, 4 * hidden_size), jnp.float32),
        "w_hh": scale * jax.random.normal(ks[2], (hidden_size, 4 * hidden_size), jnp.float32),
        "b":    scale * jax.random.normal(ks[3], (1, 4 * hidden_size), jnp.float32),
        "w_fc": scale * jax.random.normal(ks[4], (hidden_size, output_dim), jnp.float32),
        "b_fc": scale * jax.random.normal(ks[5], (1, output_dim), jnp.float32),
    }


if __name__ == "__main__":
    # Small shapes consistent with the module's forward.
    num_embeddings = 50     # vocab size
    embedding_dim = 32
    hidden_size = 32
    output_dim = 1          # hparams['output_dim']
    seq_len = 8
    batch = 4               # wrapper pads batch to 8 sublanes internally

    key = jax.random.PRNGKey(0)
    k_seq, k_par = jax.random.split(key)

    params = init_params(k_par, num_embeddings, embedding_dim, hidden_size, output_dim)

    # Token ids (seq_len, batch); pad with 0 beyond each sequence's length.
    lengths = jnp.array([8, 6, 5, 3], dtype=jnp.int32)        # sorted desc (packed-seq convention)
    tokens = jax.random.randint(k_seq, (seq_len, batch), 1, num_embeddings, dtype=jnp.int32)
    time_idx = jnp.arange(seq_len, dtype=jnp.int32)[:, None]  # (T, 1)
    sequence = jnp.where(time_idx < lengths[None, :], tokens, 0)

    out = rnn_classifier_forward(sequence, lengths, params)
    out = jax.block_until_ready(out)

    ref = reference_forward(sequence, lengths, params)
    assert out.shape == (batch,)
    # bf16 MXU operands / bf16 gx stream with f32 accumulation -> looser tolerance than pure f32.
    assert jnp.allclose(out, ref, atol=1e-2, rtol=1e-2), (out, ref)
    print("KERNEL_OK")
</pallas_src>

<mosaic_0001>
module attributes {stable_mosaic.version = 11 : i64} {
  func.func @lstm_chunk_kernel(%arg0: i32, %arg1: i32, %arg2: memref<1xi32, #tpu.memory_space<smem>>, %arg3: memref<8x1xi32, #tpu.memory_space<vmem>>, %arg4: memref<8x8x128xbf16, #tpu.memory_space<vmem>>, %arg5: memref<32x128xbf16, #tpu.memory_space<vmem>>, %arg6: memref<8x32xf32, #tpu.memory_space<vmem>>, %arg7: memref<8x32xf32, #tpu.memory_space<vmem>>, %arg8: memref<8x32xf32, #tpu.memory_space<vmem>>) attributes {dimension_semantics = [#tpu.dimension_semantics<parallel>, #tpu.dimension_semantics<arbitrary>], iteration_bounds = array<i64: 1, 1>, scalar_prefetch = 1 : i64, scratch_operands = 2 : i64, tpu.core_type = #tpu.core_type<tc>, window_params = [{transform_indices = @transform_0, window_bounds = array<i64: 8, 1>}, {transform_indices = @transform_1, window_bounds = array<i64: 8, 8, 128>}, {pipeline_mode = #tpu.pipeline_mode<synchronous>, transform_indices = @transform_2, window_bounds = array<i64: 32, 128>}, {transform_indices = @transform_3, window_bounds = array<i64: 8, 32>}]} {
    %c0_i32 = arith.constant 0 : i32
    %0 = arith.cmpi eq, %arg1, %c0_i32 : i32
    %1 = arith.extui %0 : i1 to i32
    %c0_i32_0 = arith.constant 0 : i32
    %2 = arith.cmpi ne, %1, %c0_i32_0 : i32
    scf.if %2 {
      %cst = arith.constant 0.000000e+00 : f32
      %11 = vector.broadcast %cst : f32 to vector<8x32xf32>
      %c0_4 = arith.constant 0 : index
      %c0_5 = arith.constant 0 : index
      %12 = vector.load %arg7[%c0_4, %c0_5] : memref<8x32xf32, #tpu.memory_space<vmem>>, vector<8x32xf32>
      tpu.vector_store %arg7[%c0_4, %c0_5], %11 {strides = array<i32>} : memref<8x32xf32, #tpu.memory_space<vmem>>, vector<8x32xf32>,
      %cst_6 = arith.constant 0.000000e+00 : f32
      %13 = vector.broadcast %cst_6 : f32 to vector<8x32xf32>
      %c0_7 = arith.constant 0 : index
      %c0_8 = arith.constant 0 : index
      %14 = vector.load %arg8[%c0_7, %c0_8] : memref<8x32xf32, #tpu.memory_space<vmem>>, vector<8x32xf32>
      tpu.vector_store %arg8[%c0_7, %c0_8], %13 {strides = array<i32>} : memref<8x32xf32, #tpu.memory_space<vmem>>, vector<8x32xf32>,
    } else {
    }
    %c8_i32 = arith.constant 8 : i32
    %3 = arith.muli %arg1, %c8_i32 : i32
    %c0 = arith.constant 0 : index
    %4 = memref.load %arg2[%c0] : memref<1xi32, #tpu.memory_space<smem>>
    %5 = arith.cmpi slt, %3, %4 : i32
    %6 = arith.extui %5 : i1 to i32
    %c0_i32_1 = arith.constant 0 : i32
    %7 = arith.cmpi ne, %6, %c0_i32_1 : i32
    scf.if %7 {
      %c0_4 = arith.constant 0 : index
      %c0_5 = arith.constant 0 : index
      %11 = vector.load %arg5[%c0_4, %c0_5] : memref<32x128xbf16, #tpu.memory_space<vmem>>, vector<32x128xbf16>
      %c0_6 = arith.constant 0 : index
      %c0_7 = arith.constant 0 : index
      %12 = vector.load %arg3[%c0_6, %c0_7] : memref<8x1xi32, #tpu.memory_space<vmem>>, vector<8x1xi32>
      %13 = vector.broadcast %3 : i32 to vector<8x1xi32>
      %14 = arith.subi %12, %13 : vector<8x1xi32>
      %c0_8 = arith.constant 0 : index
      %c0_9 = arith.constant 0 : index
      %15 = vector.load %arg7[%c0_8, %c0_9] : memref<8x32xf32, #tpu.memory_space<vmem>>, vector<8x32xf32>
      %c0_10 = arith.constant 0 : index
      %c0_11 = arith.constant 0 : index
      %16 = vector.load %arg8[%c0_10, %c0_11] : memref<8x32xf32, #tpu.memory_space<vmem>>, vector<8x32xf32>
      %c0_i32_12 = arith.constant 0 : i32
      %17 = arith.index_cast %c0_i32_12 : i32 to index
      %c0_13 = arith.constant 0 : index
      %c0_14 = arith.constant 0 : index
      %18 = vector.load %arg4[%17, %c0_13, %c0_14] : memref<8x8x128xbf16, #tpu.memory_space<vmem>>, vector<1x8x128xbf16>
      %19 = vector.shape_cast %18 : vector<1x8x128xbf16> to vector<8x128xbf16>
      %20 = arith.extf %19 : vector<8x128xbf16> to vector<8x128xf32>
      %21 = arith.truncf %15 : vector<8x32xf32> to vector<8x32xbf16>
      %cst = arith.constant dense<0.000000e+00> : vector<8x128xf32>
      %22 = tpu.matmul %21, %11, %cst {dimension_numbers = #tpu.dot_dimension_numbers<[1], [0], [0], [1], [0, 0, 1, 1], [], []>} : vector<8x32xbf16>, vector<32x128xbf16>, vector<8x128xf32> -> vector<8x128xf32>
      %23 = arith.addf %20, %22 : vector<8x128xf32>
      %24 = arith.negf %23 : vector<8x128xf32>
      %25 = math.exp %24 : vector<8x128xf32>
      %cst_15 = arith.constant 1.000000e+00 : f32
      %26 = vector.broadcast %cst_15 : f32 to vector<8x128xf32>
      %27 = arith.addf %26, %25 : vector<8x128xf32>
      %28 = arith.divf %26, %27 : vector<8x128xf32>
      %29 = math.tanh %23 : vector<8x128xf32>
      %30 = vector.extract_strided_slice %28 {offsets = [0, 0], sizes = [8, 32], strides = [1, 1]} : vector<8x128xf32> to vector<8x32xf32>
      %31 = vector.extract_strided_slice %28 {offsets = [0, 32], sizes = [8, 32], strides = [1, 1]} : vector<8x128xf32> to vector<8x32xf32>
      %32 = vector.extract_strided_slice %29 {offsets = [0, 64], sizes = [8, 32], strides = [1, 1]} : vector<8x128xf32> to vector<8x32xf32>
      %33 = vector.extract_strided_slice %28 {offsets = [0, 96], sizes = [8, 32], strides = [1, 1]} : vector<8x128xf32> to vector<8x32xf32>
      %34 = arith.mulf %31, %16 : vector<8x32xf32>
      %35 = arith.mulf %30, %32 : vector<8x32xf32>
      %36 = arith.addf %34, %35 : vector<8x32xf32>
      %37 = math.tanh %36 : vector<8x32xf32>
      %38 = arith.mulf %33, %37 : vector<8x32xf32>
      %39 = vector.broadcast %c0_i32_12 : i32 to vector<8x1xi32>
      %40 = arith.cmpi sgt, %14, %39 : vector<8x1xi32>
      %41 = vector.shape_cast %40 : vector<8x1xi1> to vector<8x1xi1>
      %42 = vector.broadcast %41 : vector<8x1xi1> to vector<8x32xi1>
      %43 = arith.select %42, %38, %15 : vector<8x32xi1>, vector<8x32xf32>
      %44 = vector.shape_cast %40 : vector<8x1xi1> to vector<8x1xi1>
      %45 = vector.broadcast %44 : vector<8x1xi1> to vector<8x32xi1>
      %46 = arith.select %45, %36, %16 : vector<8x32xi1>, vector<8x32xf32>
      %c1_i32 = arith.constant 1 : i32
      %47 = arith.index_cast %c1_i32 : i32 to index
      %c0_16 = arith.constant 0 : index
      %c0_17 = arith.constant 0 : index
      %48 = vector.load %arg4[%47, %c0_16, %c0_17] : memref<8x8x128xbf16, #tpu.memory_space<vmem>>, vector<1x8x128xbf16>
      %49 = vector.shape_cast %48 : vector<1x8x128xbf16> to vector<8x128xbf16>
      %50 = arith.extf %49 : vector<8x128xbf16> to vector<8x128xf32>
      %51 = arith.truncf %43 : vector<8x32xf32> to vector<8x32xbf16>
      %cst_18 = arith.constant dense<0.000000e+00> : vector<8x128xf32>
      %52 = tpu.matmul %51, %11, %cst_18 {dimension_numbers = #tpu.dot_dimension_numbers<[1], [0], [0], [1], [0, 0, 1, 1], [], []>} : vector<8x32xbf16>, vector<32x128xbf16>, vector<8x128xf32> -> vector<8x128xf32>
      %53 = arith.addf %50, %52 : vector<8x128xf32>
      %54 = arith.negf %53 : vector<8x128xf32>
      %55 = math.exp %54 : vector<8x128xf32>
      %cst_19 = arith.constant 1.000000e+00 : f32
      %56 = vector.broadcast %cst_19 : f32 to vector<8x128xf32>
      %57 = arith.addf %56, %55 : vector<8x128xf32>
      %58 = arith.divf %56, %57 : vector<8x128xf32>
      %59 = math.tanh %53 : vector<8x128xf32>
      %60 = vector.extract_strided_slice %58 {offsets = [0, 0], sizes = [8, 32], strides = [1, 1]} : vector<8x128xf32> to vector<8x32xf32>
      %61 = vector.extract_strided_slice %58 {offsets = [0, 32], sizes = [8, 32], strides = [1, 1]} : vector<8x128xf32> to vector<8x32xf32>
      %62 = vector.extract_strided_slice %59 {offsets = [0, 64], sizes = [8, 32], strides = [1, 1]} : vector<8x128xf32> to vector<8x32xf32>
      %63 = vector.extract_strided_slice %58 {offsets = [0, 96], sizes = [8, 32], strides = [1, 1]} : vector<8x128xf32> to vector<8x32xf32>
      %64 = arith.mulf %61, %46 : vector<8x32xf32>
      %65 = arith.mulf %60, %62 : vector<8x32xf32>
      %66 = arith.addf %64, %65 : vector<8x32xf32>
      %67 = math.tanh %66 : vector<8x32xf32>
      %68 = arith.mulf %63, %67 : vector<8x32xf32>
      %69 = vector.broadcast %c1_i32 : i32 to vector<8x1xi32>
      %70 = arith.cmpi sgt, %14, %69 : vector<8x1xi32>
      %71 = vector.shape_cast %70 : vector<8x1xi1> to vector<8x1xi1>
      %72 = vector.broadcast %71 : vector<8x1xi1> to vector<8x32xi1>
      %73 = arith.select %72, %68, %43 : vector<8x32xi1>, vector<8x32xf32>
      %74 = vector.shape_cast %70 : vector<8x1xi1> to vector<8x1xi1>
      %75 = vector.broadcast %74 : vector<8x1xi1> to vector<8x32xi1>
      %76 = arith.select %75, %66, %46 : vector<8x32xi1>, vector<8x32xf32>
      %c2_i32 = arith.constant 2 : i32
      %77 = arith.index_cast %c2_i32 : i32 to index
      %c0_20 = arith.constant 0 : index
      %c0_21 = arith.constant 0 : index
      %78 = vector.load %arg4[%77, %c0_20, %c0_21] : memref<8x8x128xbf16, #tpu.memory_space<vmem>>, vector<1x8x128xbf16>
      %79 = vector.shape_cast %78 : vector<1x8x128xbf16> to vector<8x128xbf16>
      %80 = arith.extf %79 : vector<8x128xbf16> to vector<8x128xf32>
      %81 = arith.truncf %73 : vector<8x32xf32> to vector<8x32xbf16>
      %cst_22 = arith.constant dense<0.000000e+00> : vector<8x128xf32>
      %82 = tpu.matmul %81, %11, %cst_22 {dimension_numbers = #tpu.dot_dimension_numbers<[1], [0], [0], [1], [0, 0, 1, 1], [], []>} : vector<8x32xbf16>, vector<32x128xbf16>, vector<8x128xf32> -> vector<8x128xf32>
      %83 = arith.addf %80, %82 : vector<8x128xf32>
      %84 = arith.negf %83 : vector<8x128xf32>
      %85 = math.exp %84 : vector<8x128xf32>
      %cst_23 = arith.constant 1.000000e+00 : f32
      %86 = vector.broadcast %cst_23 : f32 to vector<8x128xf32>
      %87 = arith.addf %86, %85 : vector<8x128xf32>
      %88 = arith.divf %86, %87 : vector<8x128xf32>
      %89 = math.tanh %83 : vector<8x128xf32>
      %90 = vector.extract_strided_slice %88 {offsets = [0, 0], sizes = [8, 32], strides = [1, 1]} : vector<8x128xf32> to vector<8x32xf32>
      %91 = vector.extract_strided_slice %88 {offsets = [0, 32], sizes = [8, 32], strides = [1, 1]} : vector<8x128xf32> to vector<8x32xf32>
      %92 = vector.extract_strided_slice %89 {offsets = [0, 64], sizes = [8, 32], strides = [1, 1]} : vector<8x128xf32> to vector<8x32xf32>
      %93 = vector.extract_strided_slice %88 {offsets = [0, 96], sizes = [8, 32], strides = [1, 1]} : vector<8x128xf32> to vector<8x32xf32>
      %94 = arith.mulf %91, %76 : vector<8x32xf32>
      %95 = arith.mulf %90, %92 : vector<8x32xf32>
      %96 = arith.addf %94, %95 : vector<8x32xf32>
      %97 = math.tanh %96 : vector<8x32xf32>
      %98 = arith.mulf %93, %97 : vector<8x32xf32>
      %99 = vector.broadcast %c2_i32 : i32 to vector<8x1xi32>
      %100 = arith.cmpi sgt, %14, %99 : vector<8x1xi32>
      %101 = vector.shape_cast %100 : vector<8x1xi1> to vector<8x1xi1>
      %102 = vector.broadcast %101 : vector<8x1xi1> to vector<8x32xi1>
      %103 = arith.select %102, %98, %73 : vector<8x32xi1>, vector<8x32xf32>
      %104 = vector.shape_cast %100 : vector<8x1xi1> to vector<8x1xi1>
      %105 = vector.broadcast %104 : vector<8x1xi1> to vector<8x32xi1>
      %106 = arith.select %105, %96, %76 : vector<8x32xi1>, vector<8x32xf32>
      %c3_i32 = arith.constant 3 : i32
      %107 = arith.index_cast %c3_i32 : i32 to index
      %c0_24 = arith.constant 0 : index
      %c0_25 = arith.constant 0 : index
      %108 = vector.load %arg4[%107, %c0_24, %c0_25] : memref<8x8x128xbf16, #tpu.memory_space<vmem>>, vector<1x8x128xbf16>
      %109 = vector.shape_cast %108 : vector<1x8x128xbf16> to vector<8x128xbf16>
      %110 = arith.extf %109 : vector<8x128xbf16> to vector<8x128xf32>
      %111 = arith.truncf %103 : vector<8x32xf32> to vector<8x32xbf16>
      %cst_26 = arith.constant dense<0.000000e+00> : vector<8x128xf32>
      %112 = tpu.matmul %111, %11, %cst_26 {dimension_numbers = #tpu.dot_dimension_numbers<[1], [0], [0], [1], [0, 0, 1, 1], [], []>} : vector<8x32xbf16>, vector<32x128xbf16>, vector<8x128xf32> -> vector<8x128xf32>
      %113 = arith.addf %110, %112 : vector<8x128xf32>
      %114 = arith.negf %113 : vector<8x128xf32>
      %115 = math.exp %114 : vector<8x128xf32>
      %cst_27 = arith.constant 1.000000e+00 : f32
      %116 = vector.broadcast %cst_27 : f32 to vector<8x128xf32>
      %117 = arith.addf %116, %115 : vector<8x128xf32>
      %118 = arith.divf %116, %117 : vector<8x128xf32>
      %119 = math.tanh %113 : vector<8x128xf32>
      %120 = vector.extract_strided_slice %118 {offsets = [0, 0], sizes = [8, 32], strides = [1, 1]} : vector<8x128xf32> to vector<8x32xf32>
      %121 = vector.extract_strided_slice %118 {offsets = [0, 32], sizes = [8, 32], strides = [1, 1]} : vector<8x128xf32> to vector<8x32xf32>
      %122 = vector.extract_strided_slice %119 {offsets = [0, 64], sizes = [8, 32], strides = [1, 1]} : vector<8x128xf32> to vector<8x32xf32>
      %123 = vector.extract_strided_slice %118 {offsets = [0, 96], sizes = [8, 32], strides = [1, 1]} : vector<8x128xf32> to vector<8x32xf32>
      %124 = arith.mulf %121, %106 : vector<8x32xf32>
      %125 = arith.mulf %120, %122 : vector<8x32xf32>
      %126 = arith.addf %124, %125 : vector<8x32xf32>
      %127 = math.tanh %126 : vector<8x32xf32>
      %128 = arith.mulf %123, %127 : vector<8x32xf32>
      %129 = vector.broadcast %c3_i32 : i32 to vector<8x1xi32>
      %130 = arith.cmpi sgt, %14, %129 : vector<8x1xi32>
      %131 = vector.shape_cast %130 : vector<8x1xi1> to vector<8x1xi1>
      %132 = vector.broadcast %131 : vector<8x1xi1> to vector<8x32xi1>
      %133 = arith.select %132, %128, %103 : vector<8x32xi1>, vector<8x32xf32>
      %134 = vector.shape_cast %130 : vector<8x1xi1> to vector<8x1xi1>
      %135 = vector.broadcast %134 : vector<8x1xi1> to vector<8x32xi1>
      %136 = arith.select %135, %126, %106 : vector<8x32xi1>, vector<8x32xf32>
      %c4_i32 = arith.constant 4 : i32
      %137 = arith.index_cast %c4_i32 : i32 to index
      %c0_28 = arith.constant 0 : index
      %c0_29 = arith.constant 0 : index
      %138 = vector.load %arg4[%137, %c0_28, %c0_29] : memref<8x8x128xbf16, #tpu.memory_space<vmem>>, vector<1x8x128xbf16>
      %139 = vector.shape_cast %138 : vector<1x8x128xbf16> to vector<8x128xbf16>
      %140 = arith.extf %139 : vector<8x128xbf16> to vector<8x128xf32>
      %141 = arith.truncf %133 : vector<8x32xf32> to vector<8x32xbf16>
      %cst_30 = arith.constant dense<0.000000e+00> : vector<8x128xf32>
      %142 = tpu.matmul %141, %11, %cst_30 {dimension_numbers = #tpu.dot_dimension_numbers<[1], [0], [0], [1], [0, 0, 1, 1], [], []>} : vector<8x32xbf16>, vector<32x128xbf16>, vector<8x128xf32> -> vector<8x128xf32>
      %143 = arith.addf %140, %142 : vector<8x128xf32>
      %144 = arith.negf %143 : vector<8x128xf32>
      %145 = math.exp %144 : vector<8x128xf32>
      %cst_31 = arith.constant 1.000000e+00 : f32
      %146 = vector.broadcast %cst_31 : f32 to vector<8x128xf32>
      %147 = arith.addf %146, %145 : vector<8x128xf32>
      %148 = arith.divf %146, %147 : vector<8x128xf32>
      %149 = math.tanh %143 : vector<8x128xf32>
      %150 = vector.extract_strided_slice %148 {offsets = [0, 0], sizes = [8, 32], strides = [1, 1]} : vector<8x128xf32> to vector<8x32xf32>
      %151 = vector.extract_strided_slice %148 {offsets = [0, 32], sizes = [8, 32], strides = [1, 1]} : vector<8x128xf32> to vector<8x32xf32>
      %152 = vector.extract_strided_slice %149 {offsets = [0, 64], sizes = [8, 32], strides = [1, 1]} : vector<8x128xf32> to vector<8x32xf32>
      %153 = vector.extract_strided_slice %148 {offsets = [0, 96], sizes = [8, 32], strides = [1, 1]} : vector<8x128xf32> to vector<8x32xf32>
      %154 = arith.mulf %151, %136 : vector<8x32xf32>
      %155 = arith.mulf %150, %152 : vector<8x32xf32>
      %156 = arith.addf %154, %155 : vector<8x32xf32>
      %157 = math.tanh %156 : vector<8x32xf32>
      %158 = arith.mulf %153, %157 : vector<8x32xf32>
      %159 = vector.broadcast %c4_i32 : i32 to vector<8x1xi32>
      %160 = arith.cmpi sgt, %14, %159 : vector<8x1xi32>
      %161 = vector.shape_cast %160 : vector<8x1xi1> to vector<8x1xi1>
      %162 = vector.broadcast %161 : vector<8x1xi1> to vector<8x32xi1>
      %163 = arith.select %162, %158, %133 : vector<8x32xi1>, vector<8x32xf32>
      %164 = vector.shape_cast %160 : vector<8x1xi1> to vector<8x1xi1>
      %165 = vector.broadcast %164 : vector<8x1xi1> to vector<8x32xi1>
      %166 = arith.select %165, %156, %136 : vector<8x32xi1>, vector<8x32xf32>
      %c5_i32 = arith.constant 5 : i32
      %167 = arith.index_cast %c5_i32 : i32 to index
      %c0_32 = arith.constant 0 : index
      %c0_33 = arith.constant 0 : index
      %168 = vector.load %arg4[%167, %c0_32, %c0_33] : memref<8x8x128xbf16, #tpu.memory_space<vmem>>, vector<1x8x128xbf16>
      %169 = vector.shape_cast %168 : vector<1x8x128xbf16> to vector<8x128xbf16>
      %170 = arith.extf %169 : vector<8x128xbf16> to vector<8x128xf32>
      %171 = arith.truncf %163 : vector<8x32xf32> to vector<8x32xbf16>
      %cst_34 = arith.constant dense<0.000000e+00> : vector<8x128xf32>
      %172 = tpu.matmul %171, %11, %cst_34 {dimension_numbers = #tpu.dot_dimension_numbers<[1], [0], [0], [1], [0, 0, 1, 1], [], []>} : vector<8x32xbf16>, vector<32x128xbf16>, vector<8x128xf32> -> vector<8x128xf32>
      %173 = arith.addf %170, %172 : vector<8x128xf32>
      %174 = arith.negf %173 : vector<8x128xf32>
      %175 = math.exp %174 : vector<8x128xf32>
      %cst_35 = arith.constant 1.000000e+00 : f32
      %176 = vector.broadcast %cst_35 : f32 to vector<8x128xf32>
      %177 = arith.addf %176, %175 : vector<8x128xf32>
      %178 = arith.divf %176, %177 : vector<8x128xf32>
      %179 = math.tanh %173 : vector<8x128xf32>
      %180 = vector.extract_strided_slice %178 {offsets = [0, 0], sizes = [8, 32], strides = [1, 1]} : vector<8x128xf32> to vector<8x32xf32>
      %181 = vector.extract_strided_slice %178 {offsets = [0, 32], sizes = [8, 32], strides = [1, 1]} : vector<8x128xf32> to vector<8x32xf32>
      %182 = vector.extract_strided_slice %179 {offsets = [0, 64], sizes = [8, 32], strides = [1, 1]} : vector<8x128xf32> to vector<8x32xf32>
      %183 = vector.extract_strided_slice %178 {offsets = [0, 96], sizes = [8, 32], strides = [1, 1]} : vector<8x128xf32> to vector<8x32xf32>
      %184 = arith.mulf %181, %166 : vector<8x32xf32>
      %185 = arith.mulf %180, %182 : vector<8x32xf32>
      %186 = arith.addf %184, %185 : vector<8x32xf32>
      %187 = math.tanh %186 : vector<8x32xf32>
      %188 = arith.mulf %183, %187 : vector<8x32xf32>
      %189 = vector.broadcast %c5_i32 : i32 to vector<8x1xi32>
      %190 = arith.cmpi sgt, %14, %189 : vector<8x1xi32>
      %191 = vector.shape_cast %190 : vector<8x1xi1> to vector<8x1xi1>
      %192 = vector.broadcast %191 : vector<8x1xi1> to vector<8x32xi1>
      %193 = arith.select %192, %188, %163 : vector<8x32xi1>, vector<8x32xf32>
      %194 = vector.shape_cast %190 : vector<8x1xi1> to vector<8x1xi1>
      %195 = vector.broadcast %194 : vector<8x1xi1> to vector<8x32xi1>
      %196 = arith.select %195, %186, %166 : vector<8x32xi1>, vector<8x32xf32>
      %c6_i32 = arith.constant 6 : i32
      %197 = arith.index_cast %c6_i32 : i32 to index
      %c0_36 = arith.constant 0 : index
      %c0_37 = arith.constant 0 : index
      %198 = vector.load %arg4[%197, %c0_36, %c0_37] : memref<8x8x128xbf16, #tpu.memory_space<vmem>>, vector<1x8x128xbf16>
      %199 = vector.shape_cast %198 : vector<1x8x128xbf16> to vector<8x128xbf16>
      %200 = arith.extf %199 : vector<8x128xbf16> to vector<8x128xf32>
      %201 = arith.truncf %193 : vector<8x32xf32> to vector<8x32xbf16>
      %cst_38 = arith.constant dense<0.000000e+00> : vector<8x128xf32>
      %202 = tpu.matmul %201, %11, %cst_38 {dimension_numbers = #tpu.dot_dimension_numbers<[1], [0], [0], [1], [0, 0, 1, 1], [], []>} : vector<8x32xbf16>, vector<32x128xbf16>, vector<8x128xf32> -> vector<8x128xf32>
      %203 = arith.addf %200, %202 : vector<8x128xf32>
      %204 = arith.negf %203 : vector<8x128xf32>
      %205 = math.exp %204 : vector<8x128xf32>
      %cst_39 = arith.constant 1.000000e+00 : f32
      %206 = vector.broadcast %cst_39 : f32 to vector<8x128xf32>
      %207 = arith.addf %206, %205 : vector<8x128xf32>
      %208 = arith.divf %206, %207 : vector<8x128xf32>
      %209 = math.tanh %203 : vector<8x128xf32>
      %210 = vector.extract_strided_slice %208 {offsets = [0, 0], sizes = [8, 32], strides = [1, 1]} : vector<8x128xf32> to vector<8x32xf32>
      %211 = vector.extract_strided_slice %208 {offsets = [0, 32], sizes = [8, 32], strides = [1, 1]} : vector<8x128xf32> to vector<8x32xf32>
      %212 = vector.extract_strided_slice %209 {offsets = [0, 64], sizes = [8, 32], strides = [1, 1]} : vector<8x128xf32> to vector<8x32xf32>
      %213 = vector.extract_strided_slice %208 {offsets = [0, 96], sizes = [8, 32], strides = [1, 1]} : vector<8x128xf32> to vector<8x32xf32>
      %214 = arith.mulf %211, %196 : vector<8x32xf32>
      %215 = arith.mulf %210, %212 : vector<8x32xf32>
      %216 = arith.addf %214, %215 : vector<8x32xf32>
      %217 = math.tanh %216 : vector<8x32xf32>
      %218 = arith.mulf %213, %217 : vector<8x32xf32>
      %219 = vector.broadcast %c6_i32 : i32 to vector<8x1xi32>
      %220 = arith.cmpi sgt, %14, %219 : vector<8x1xi32>
      %221 = vector.shape_cast %220 : vector<8x1xi1> to vector<8x1xi1>
      %222 = vector.broadcast %221 : vector<8x1xi1> to vector<8x32xi1>
      %223 = arith.select %222, %218, %193 : vector<8x32xi1>, vector<8x32xf32>
      %224 = vector.shape_cast %220 : vector<8x1xi1> to vector<8x1xi1>
      %225 = vector.broadcast %224 : vector<8x1xi1> to vector<8x32xi1>
      %226 = arith.select %225, %216, %196 : vector<8x32xi1>, vector<8x32xf32>
      %c7_i32 = arith.constant 7 : i32
      %227 = arith.index_cast %c7_i32 : i32 to index
      %c0_40 = arith.constant 0 : index
      %c0_41 = arith.constant 0 : index
      %228 = vector.load %arg4[%227, %c0_40, %c0_41] : memref<8x8x128xbf16, #tpu.memory_space<vmem>>, vector<1x8x128xbf16>
      %229 = vector.shape_cast %228 : vector<1x8x128xbf16> to vector<8x128xbf16>
      %230 = arith.extf %229 : vector<8x128xbf16> to vector<8x128xf32>
      %231 = arith.truncf %223 : vector<8x32xf32> to vector<8x32xbf16>
      %cst_42 = arith.constant dense<0.000000e+00> : vector<8x128xf32>
      %232 = tpu.matmul %231, %11, %cst_42 {dimension_numbers = #tpu.dot_dimension_numbers<[1], [0], [0], [1], [0, 0, 1, 1], [], []>} : vector<8x32xbf16>, vector<32x128xbf16>, vector<8x128xf32> -> vector<8x128xf32>
      %233 = arith.addf %230, %232 : vector<8x128xf32>
      %234 = arith.negf %233 : vector<8x128xf32>
      %235 = math.exp %234 : vector<8x128xf32>
      %cst_43 = arith.constant 1.000000e+00 : f32
      %236 = vector.broadcast %cst_43 : f32 to vector<8x128xf32>
      %237 = arith.addf %236, %235 : vector<8x128xf32>
      %238 = arith.divf %236, %237 : vector<8x128xf32>
      %239 = math.tanh %233 : vector<8x128xf32>
      %240 = vector.extract_strided_slice %238 {offsets = [0, 0], sizes = [8, 32], strides = [1, 1]} : vector<8x128xf32> to vector<8x32xf32>
      %241 = vector.extract_strided_slice %238 {offsets = [0, 32], sizes = [8, 32], strides = [1, 1]} : vector<8x128xf32> to vector<8x32xf32>
      %242 = vector.extract_strided_slice %239 {offsets = [0, 64], sizes = [8, 32], strides = [1, 1]} : vector<8x128xf32> to vector<8x32xf32>
      %243 = vector.extract_strided_slice %238 {offsets = [0, 96], sizes = [8, 32], strides = [1, 1]} : vector<8x128xf32> to vector<8x32xf32>
      %244 = arith.mulf %241, %226 : vector<8x32xf32>
      %245 = arith.mulf %240, %242 : vector<8x32xf32>
      %246 = arith.addf %244, %245 : vector<8x32xf32>
      %247 = math.tanh %246 : vector<8x32xf32>
      %248 = arith.mulf %243, %247 : vector<8x32xf32>
      %249 = vector.broadcast %c7_i32 : i32 to vector<8x1xi32>
      %250 = arith.cmpi sgt, %14, %249 : vector<8x1xi32>
      %251 = vector.shape_cast %250 : vector<8x1xi1> to vector<8x1xi1>
      %252 = vector.broadcast %251 : vector<8x1xi1> to vector<8x32xi1>
      %253 = arith.select %252, %248, %223 : vector<8x32xi1>, vector<8x32xf32>
      %254 = vector.shape_cast %250 : vector<8x1xi1> to vector<8x1xi1>
      %255 = vector.broadcast %254 : vector<8x1xi1> to vector<8x32xi1>
      %256 = arith.select %255, %246, %226 : vector<8x32xi1>, vector<8x32xf32>
      %c8_i32_44 = arith.constant 8 : i32
      %c0_45 = arith.constant 0 : index
      %c0_46 = arith.constant 0 : index
      %257 = vector.load %arg7[%c0_45, %c0_46] : memref<8x32xf32, #tpu.memory_space<vmem>>, vector<8x32xf32>
      tpu.vector_store %arg7[%c0_45, %c0_46], %253 {strides = array<i32>} : memref<8x32xf32, #tpu.memory_space<vmem>>, vector<8x32xf32>,
      %c0_47 = arith.constant 0 : index
      %c0_48 = arith.constant 0 : index
      %258 = vector.load %arg8[%c0_47, %c0_48] : memref<8x32xf32, #tpu.memory_space<vmem>>, vector<8x32xf32>
      tpu.vector_store %arg8[%c0_47, %c0_48], %256 {strides = array<i32>} : memref<8x32xf32, #tpu.memory_space<vmem>>, vector<8x32xf32>,
    } else {
    }
    %c0_i32_2 = arith.constant 0 : i32
    %8 = arith.cmpi eq, %arg1, %c0_i32_2 : i32
    %9 = arith.extui %8 : i1 to i32
    %c0_i32_3 = arith.constant 0 : i32
    %10 = arith.cmpi ne, %9, %c0_i32_3 : i32
    scf.if %10 {
      %c0_4 = arith.constant 0 : index
      %c0_5 = arith.constant 0 : index
      %11 = vector.load %arg7[%c0_4, %c0_5] : memref<8x32xf32, #tpu.memory_space<vmem>>, vector<8x32xf32>
      %c0_6 = arith.constant 0 : index
      %c0_7 = arith.constant 0 : index
      %12 = vector.load %arg6[%c0_6, %c0_7] : memref<8x32xf32, #tpu.memory_space<vmem>>, vector<8x32xf32>
      tpu.vector_store %arg6[%c0_6, %c0_7], %11 {strides = array<i32>} : memref<8x32xf32, #tpu.memory_space<vmem>>, vector<8x32xf32>,
    } else {
    }
    return
  }
  func.func @transform_0(%arg0: i32, %arg1: i32, %arg2: memref<1xi32, #tpu.memory_space<smem>>) -> (i32, i32) {
    %c0_i32 = arith.constant 0 : i32
    %c0_i32_0 = arith.constant 0 : i32
    return %arg0, %c0_i32 : i32, i32
  }
  func.func @transform_1(%arg0: i32, %arg1: i32, %arg2: memref<1xi32, #tpu.memory_space<smem>>) -> (i32, i32, i32) {
    %c0_i32 = arith.constant 0 : i32
    %c0_i32_0 = arith.constant 0 : i32
    return %arg1, %arg0, %c0_i32 : i32, i32, i32
  }
  func.func @transform_2(%arg0: i32, %arg1: i32, %arg2: memref<1xi32, #tpu.memory_space<smem>>) -> (i32, i32) {
    %c0_i32 = arith.constant 0 : i32
    %c0_i32_0 = arith.constant 0 : i32
    %c0_i32_1 = arith.constant 0 : i32
    return %c0_i32, %c0_i32_0 : i32, i32
  }
  func.func @transform_3(%arg0: i32, %arg1: i32, %arg2: memref<1xi32, #tpu.memory_space<smem>>) -> (i32, i32) {
    %c0_i32 = arith.constant 0 : i32
    %c0_i32_0 = arith.constant 0 : i32
    return %arg0, %c0_i32 : i32, i32
  }
}

</mosaic_0001>

<bundles_post_ra>
// kernel: rnn_classifier_forward.1
= control target key start
LH: loop header
LB: loop body
LE: loop exit
PB: predicated region body
PF: predicated region fallthrough
CT: control target
= control target key end

     0   :  { %vm21_vm0 = vcmask 261120   ;;  %v930_v0 = vmov 0.0   ;;  %s1123_s0 = inlined_call_operand.<no memory space> [shape: s32[1], index: 0, kind: input, shape index: {}]   ;;  %s1124_s1 = inlined_call_operand.vmem [shape: s32[8,1], index: 1, kind: input, shape index: {}]   ;;  %s1125_s2 = inlined_call_operand.vmem [shape: bf16[8,8,128], index: 2, kind: input, shape index: {}]   ;;  %s1126_s3 = inlined_call_operand.vmem [shape: bf16[32,128], index: 3, kind: input, shape index: {}]   ;;  %s1127_s4 = inlined_call_operand.vmem [shape: f32[8,32], index: 4, kind: output, shape index: {}]  }
   0x1   :  { %22 = vst.msk [vmem:[#allocation2] sm:$0xff] %vm21_vm0, %v930_v0  ;;  %23 = vst.msk [vmem:[#allocation3] sm:$0xff] %vm21_vm0, %v930_v0  ;;  %p741_p0 = scmp.le.s32.totalorder %s1123_s0, 0 }
   0x2   :  { %v970_v1 = vld [vmem:[%s1126_s3] sm:$0xff] (!%p741_p0)   ;;  %v931_v2 = vmov (!%p741_p0), 0.0   ;;  %v978_v3 = vld [vmem:[%s1126_s3 + $0x8] sm:$0xff] (!%p741_p0)   ;;  %vm932_vm1 = vmmov (!%p741_p0), 0   ;;  %v933_v13 = vmov (!%p741_p0), 0   ;;  %s934_s21 = smov (!%p741_p0), 64  }
   0x3   :  { %29 = sbr.rel (%p741_p0) target bundleno = 5650 (0x1612), region = 21  ;;  %791 = vmatprep.subr.bf16.mxu0 (!%p741_p0), %v931_v2  ;;  %799 = vmatprep.subr.bf16.mxu1 (!%p741_p0), %v931_v2  ;;  %v39_v6 = vld [vmem:[%s1125_s2] sm:$0xff] (!%p741_p0)   ;;  %s935_s22 = smov (!%p741_p0), 32   ;;  %v749_v61 = vld [vmem:[%s1125_s2 + $0x8] sm:$0xff] (!%p741_p0)  }
   0x4   :  { %792 = vmatpush3.bf16.msra.mxu0 (!%p741_p0), %v970_v1  ;;  %795 = vmatprep.mubr.msk.bf16.mxu0 (!%p741_p0), %vm932_vm1, %v931_v2  ;;  %v40_v7 = vunpack.c.l.bf16 (!%p741_p0), %v39_v6  ;;  %v1008_v19 = vld [vmem:[%s1124_s1] sm:$0xff] (!%p741_p0)  ;;  %s936_s25 = smov (!%p741_p0), 96   ;;  %v141_v36 = vunpack.c.h.bf16 (!%p741_p0), %v39_v6  ;;  %v224_v62 = vunpack.c.l.bf16 (!%p741_p0), %v749_v61 }
   0x5   :  { %793 = vmatprep.subr.bf16.mxu0 (!%p741_p0), %v931_v2  ;;  %800 = vmatpush3.bf16.msra.mxu1 (!%p741_p0), %v970_v1  ;;  %vm127_vm2 = vcmp.gt.s32.totalorder (!%p741_p0), %v1008_v19, 0  ;;  %vm214_vm4 = vcmp.gt.s32.totalorder (!%p741_p0), %v1008_v19, 1  ;;  %vm297_vm6 = vcmp.gt.s32.totalorder (!%p741_p0), %v1008_v19, 2  ;;  %vm380_vm8 = vcmp.gt.s32.totalorder (!%p741_p0), %v1008_v19, 3 }
   0x6   :  { %801 = vmatprep.subr.bf16.mxu1 (!%p741_p0), %v931_v2  ;;  %803 = vmatprep.mubr.msk.bf16.mxu1 (!%p741_p0), %vm932_vm1, %v931_v2  ;;  %v128_v23 = vsel (!%p741_p0), %vm127_vm2, 1, %v933_v13  ;;  %v215_v43 = vsel (!%p741_p0), %vm214_vm4, 1, %v933_v13  ;;  %vm463_vm10 = vcmp.gt.s32.totalorder (!%p741_p0), %v1008_v19, 4  ;;  %vm546_vm12 = vcmp.gt.s32.totalorder (!%p741_p0), %v1008_v19, 5 }
   0x7   :  { %862 = vset.pattern.permute.xlu1 (!%p741_p0), %v933_v13  ;;  %863 = vset.pattern.permute.xlu0 (!%p741_p0), %v933_v13  ;;  %vm629_vm14 = vcmp.gt.s32.totalorder (!%p741_p0), %v1008_v19, 6 }
   0x8   :  { %v37_v4 = vld [vmem:[#allocation2] sm:$0xff] (!%p741_p0)  ;;  %794 = vmatpush3.bf16.msra.mxu0 (!%p741_p0), %v978_v3  ;;  %v38_v15 = vld [vmem:[#allocation3] sm:$0xff] (!%p741_p0) }
   0x9   :  { %v41_v5 = vpack.c.bf16 (!%p741_p0), %v37_v4, %v37_v4  ;;  %802 = vmatpush3.bf16.msra.mxu1 (!%p741_p0), %v978_v3  ;;  %807 = vmatprep.subr.bf16.mxu0 (!%p741_p0), %v931_v2 }
   0xa   :  { %815 = vmatprep.subr.bf16.mxu1 %v931_v2 }
   0xb   :  { %796 = vmatmul.mubr.msk.bf16.vlgmr.msra.gmra.mrb[0].mxu0 %vm21_vm0, %v41_v5 }
   0xc   :  { %808 = vmatpush3.bf16.msra.mxu0 %v970_v1  ;;  %811 = vmatprep.mubr.msk.bf16.mxu0 %vm932_vm1, %v931_v2 }
   0xd   :  { %809 = vmatprep.subr.bf16.mxu0 %v931_v2 }
  0x10   :  { %810 = vmatpush3.bf16.msra.mxu0 %v978_v3 }
  0x11   :  { %823 = vmatprep.subr.bf16.mxu0 %v931_v2 }
  0xde   :  { %v92_v8 = vpop.f32.mrb[0].mxu0 }
  0xdf   :  { %v98_v9 = vadd.f32 %v92_v8, %v40_v7  ;;  %v797_v10 = vpop.f32.mrb[1].mxu0  ;;  %v298_v8 = vsel %vm297_vm6, 1, %v933_v13 }
  0xe0   :  { %v95_v11 = vpop.f32.mrb[2].mxu0 }
  0xe1   :  { %866 = vtanh.f32 %v98_v9  ;;  %v798_v12 = vpop.f32.mrb[3].mxu0  ;;  %v745_v16 = vmul.f32 -1.442695, %v98_v9 }
  0xe3   :  { %868 = vpow2.f32 %v745_v16 }
  0xeb   :  { %v867_v14 = vpop.eup %866 }
  0xec   :  { %112 = vrot.lane.b32.xlu0 %v867_v14, %s934_s21 }
  0xed   :  { %v869_v17 = vpop.eup %868 }
  0xee   :  { %v102_v18 = vadd.f32 1.0, %v869_v17 }
  0xf0   :  { %107 = vrot.lane.b32.xlu0 %v38_v15, %s935_s22  ;;  %870 = vrcp.f32 %v102_v18 }
  0xfa   :  { %v871_v20 = vpop.eup %870 }
 0x15e   :  { %v113_v21 = vpop.permute.xlu0 %112 }
 0x15f   :  { %v115_v22 = vmul.f32 %v871_v20, %v113_v21 }
 0x161   :  { %117 = vrot.lane.b32.xlu1 %v115_v22, %s935_s22 }
 0x162   :  { %v108_v24 = vpop.permute.xlu0 %107 }
 0x163   :  { %v110_v25 = vmul.f32 %v871_v20, %v108_v24 }
 0x165   :  { %130 = vperm.xlu1 %862, %v128_v23  }
 0x169   :  { %134 = vrot.lane.b32.xlu1 %v37_v4, %s936_s25 }
 0x1d3   :  { %v118_v26 = vpop.permute.xlu1 %117 }
 0x1d4   :  { %v120_v27 = vadd.f32 %v118_v26, %v110_v25 }
 0x1d6   :  { %872 = vtanh.f32 %v120_v27 }
 0x1e0   :  { %v873_v28 = vpop.eup %872 }
 0x1e1   :  { %123 = vrot.lane.b32.xlu0 %v873_v28, %s934_s21  ;;  %v307_v28 = vunpack.c.h.bf16 %v749_v61  ;;  %v464_v61 = vsel %vm463_vm10, 1, %v933_v13 }
 0x1e4   :  { %v131_v29 = vpop.permute.xlu1 %130 }
 0x1e5   :  { %vm132_vm3 = vcmp.eq.s32.totalorder %v131_v29, 1 }
 0x1e6   :  { %v138_v50 = vsel %vm132_vm3, %v120_v27, %v108_v24 }
 0x1e8   :  { %v135_v31 = vpop.permute.xlu1 %134 }
 0x253   :  { %v124_v30 = vpop.permute.xlu0 %123 }
 0x254   :  { %v126_v32 = vmul.f32 %v871_v20, %v124_v30 }
 0x256   :  { %v137_v33 = vsel %vm132_vm3, %v126_v32, %v135_v31 }
 0x257   :  { %v142_v34 = vpack.c.bf16 %v137_v33, %v137_v33 }
 0x259   :  { %144 = vrot.lane.b32.xlu0 %v142_v34, %s935_s22 }
 0x2cb   :  { %v145_v35 = vpop.permute.xlu0 %144 }
 0x2cc   :  { %804 = vmatmul.mubr.msk.bf16.vlgmr.msra.gmra.mrb[0].mxu1 %vm21_vm0, %v145_v35  ;;  %v381_v35 = vsel %vm380_vm8, 1, %v933_v13 }
 0x2cd   :  { %816 = vmatpush3.bf16.msra.mxu1 %v970_v1  ;;  %819 = vmatprep.mubr.msk.bf16.mxu1 %vm932_vm1, %v931_v2 }
 0x2ce   :  { %817 = vmatprep.subr.bf16.mxu1 %v931_v2 }
 0x2d1   :  { %818 = vmatpush3.bf16.msra.mxu1 %v978_v3 }
 0x2d2   :  { %831 = vmatprep.subr.bf16.mxu1 %v931_v2 }
 0x39f   :  { %v183_v37 = vpop.f32.mrb[0].mxu1 }
 0x3a0   :  { %v189_v38 = vadd.f32 %v183_v37, %v141_v36  ;;  %v805_v39 = vpop.f32.mrb[1].mxu1 }
 0x3a1   :  { %v186_v40 = vpop.f32.mrb[2].mxu1 }
 0x3a2   :  { %874 = vtanh.f32 %v189_v38  ;;  %v806_v41 = vpop.f32.mrb[3].mxu1  ;;  %v748_v44 = vmul.f32 -1.442695, %v189_v38 }
 0x3a4   :  { %876 = vpow2.f32 %v748_v44 }
 0x3ac   :  { %v875_v42 = vpop.eup %874 }
 0x3ad   :  { %199 = vrot.lane.b32.xlu1 %v875_v42, %s934_s21 }
 0x3ae   :  { %v877_v45 = vpop.eup %876 }
 0x3af   :  { %v193_v46 = vadd.f32 1.0, %v877_v45 }
 0x3b1   :  { %217 = vperm.xlu1 %862, %v215_v43   ;;  %878 = vrcp.f32 %v193_v46 }
 0x3bb   :  { %v879_v47 = vpop.eup %878 }
 0x3bc   :  { %v197_v51 = vmul.f32 %v879_v47, %v138_v50 }
 0x41f   :  { %v200_v48 = vpop.permute.xlu1 %199 }
 0x420   :  { %v202_v49 = vmul.f32 %v879_v47, %v200_v48 }
 0x422   :  { %204 = vrot.lane.b32.xlu0 %v202_v49, %s935_s22 }
 0x430   :  { %v218_v55 = vpop.permute.xlu1 %217 }
 0x431   :  { %vm219_vm5 = vcmp.eq.s32.totalorder %v218_v55, 1 }
 0x494   :  { %v205_v52 = vpop.permute.xlu0 %204 }
 0x495   :  { %v207_v53 = vadd.f32 %v205_v52, %v197_v51 }
 0x497   :  { %880 = vtanh.f32 %v207_v53  ;;  %v221_v16 = vsel %vm219_vm5, %v207_v53, %v138_v50  ;;  %v755_v53 = vld [vmem:[%s1125_s2 + $0x10] sm:$0xff]  }
 0x4a1   :  { %v881_v54 = vpop.eup %880 }
 0x4a2   :  { %210 = vrot.lane.b32.xlu0 %v881_v54, %s934_s21  ;;  %v390_v54 = vunpack.c.l.bf16 %v755_v53 }
 0x514   :  { %v211_v56 = vpop.permute.xlu0 %210 }
 0x515   :  { %v213_v57 = vmul.f32 %v879_v47, %v211_v56 }
 0x517   :  { %v220_v58 = vsel %vm219_vm5, %v213_v57, %v137_v33 }
 0x518   :  { %v225_v59 = vpack.c.bf16 %v220_v58, %v220_v58 }
 0x51a   :  { %227 = vrot.lane.b32.xlu1 %v225_v59, %s935_s22 }
 0x58c   :  { %v228_v60 = vpop.permute.xlu1 %227 }
 0x58d   :  { %812 = vmatmul.mubr.msk.bf16.vlgmr.msra.gmra.mrb[4].mxu0 %vm21_vm0, %v228_v60 }
 0x58e   :  { %824 = vmatpush3.bf16.msra.mxu0 %v970_v1  ;;  %827 = vmatprep.mubr.msk.bf16.mxu0 %vm932_vm1, %v931_v2 }
 0x58f   :  { %825 = vmatprep.subr.bf16.mxu0 %v931_v2 }
 0x592   :  { %826 = vmatpush3.bf16.msra.mxu0 %v978_v3 }
 0x593   :  { %839 = vmatprep.subr.bf16.mxu0 %v931_v2 }
 0x660   :  { %v266_v63 = vpop.f32.mrb[4].mxu0 }
 0x661   :  { %v272_v0 = vadd.f32 %v266_v63, %v224_v62  ;;  %v813_v4 = vpop.f32.mrb[5].mxu0 }
 0x662   :  { %v269_v5 = vpop.f32.mrb[6].mxu0 }
 0x663   :  { %882 = vtanh.f32 %v272_v0  ;;  %v814_v6 = vpop.f32.mrb[7].mxu0  ;;  %v751_v9 = vmul.f32 -1.442695, %v272_v0 }
 0x665   :  { %884 = vpow2.f32 %v751_v9 }
 0x66d   :  { %v883_v7 = vpop.eup %882 }
 0x66e   :  { %282 = vrot.lane.b32.xlu0 %v883_v7, %s934_s21 }
 0x66f   :  { %v885_v10 = vpop.eup %884 }
 0x670   :  { %v276_v11 = vadd.f32 1.0, %v885_v10 }
 0x672   :  { %300 = vperm.xlu0 %863, %v298_v8   ;;  %886 = vrcp.f32 %v276_v11 }
 0x67c   :  { %v887_v12 = vpop.eup %886 }
 0x67d   :  { %v280_v17 = vmul.f32 %v887_v12, %v221_v16 }
 0x6e0   :  { %v283_v14 = vpop.permute.xlu0 %282 }
 0x6e1   :  { %v285_v15 = vmul.f32 %v887_v12, %v283_v14 }
 0x6e3   :  { %287 = vrot.lane.b32.xlu1 %v285_v15, %s935_s22 }
 0x6f1   :  { %v301_v22 = vpop.permute.xlu0 %300 }
 0x6f2   :  { %vm302_vm7 = vcmp.eq.s32.totalorder %v301_v22, 1 }
 0x755   :  { %v288_v18 = vpop.permute.xlu1 %287 }
 0x756   :  { %v290_v20 = vadd.f32 %v288_v18, %v280_v17 }
 0x758   :  { %888 = vtanh.f32 %v290_v20  ;;  %v304_v42 = vsel %vm302_vm7, %v290_v20, %v221_v16  ;;  %v473_v20 = vunpack.c.h.bf16 %v755_v53 }
 0x762   :  { %v889_v21 = vpop.eup %888 }
 0x763   :  { %293 = vrot.lane.b32.xlu1 %v889_v21, %s934_s21 }
 0x7d5   :  { %v294_v23 = vpop.permute.xlu1 %293 }
 0x7d6   :  { %v296_v24 = vmul.f32 %v887_v12, %v294_v23 }
 0x7d8   :  { %v303_v25 = vsel %vm302_vm7, %v296_v24, %v220_v58 }
 0x7d9   :  { %v308_v26 = vpack.c.bf16 %v303_v25, %v303_v25 }
 0x7db   :  { %310 = vrot.lane.b32.xlu1 %v308_v26, %s935_s22 }
 0x84d   :  { %v311_v27 = vpop.permute.xlu1 %310 }
 0x84e   :  { %820 = vmatmul.mubr.msk.bf16.vlgmr.msra.gmra.mrb[4].mxu1 %vm21_vm0, %v311_v27 }
 0x84f   :  { %832 = vmatpush3.bf16.msra.mxu1 %v970_v1  ;;  %835 = vmatprep.mubr.msk.bf16.mxu1 %vm932_vm1, %v931_v2 }
 0x850   :  { %833 = vmatprep.subr.bf16.mxu1 %v931_v2 }
 0x853   :  { %834 = vmatpush3.bf16.msra.mxu1 %v978_v3 }
 0x854   :  { %847 = vmatprep.subr.bf16.mxu1 %v931_v2 }
 0x921   :  { %v349_v29 = vpop.f32.mrb[4].mxu1 }
 0x922   :  { %v355_v30 = vadd.f32 %v349_v29, %v307_v28  ;;  %v821_v31 = vpop.f32.mrb[5].mxu1 }
 0x923   :  { %v352_v32 = vpop.f32.mrb[6].mxu1 }
 0x924   :  { %890 = vtanh.f32 %v355_v30  ;;  %v822_v33 = vpop.f32.mrb[7].mxu1  ;;  %v754_v36 = vmul.f32 -1.442695, %v355_v30 }
 0x926   :  { %892 = vpow2.f32 %v754_v36 }
 0x92e   :  { %v891_v34 = vpop.eup %890 }
 0x92f   :  { %365 = vrot.lane.b32.xlu0 %v891_v34, %s934_s21 }
 0x930   :  { %v893_v37 = vpop.eup %892 }
 0x931   :  { %v359_v38 = vadd.f32 1.0, %v893_v37 }
 0x933   :  { %383 = vperm.xlu0 %863, %v381_v35   ;;  %894 = vrcp.f32 %v359_v38 }
 0x93d   :  { %v895_v39 = vpop.eup %894 }
 0x93e   :  { %v363_v43 = vmul.f32 %v895_v39, %v304_v42 }
 0x9a1   :  { %v366_v40 = vpop.permute.xlu0 %365 }
 0x9a2   :  { %v368_v41 = vmul.f32 %v895_v39, %v366_v40 }
 0x9a4   :  { %370 = vrot.lane.b32.xlu1 %v368_v41, %s935_s22 }
 0x9b2   :  { %v384_v47 = vpop.permute.xlu0 %383 }
 0x9b3   :  { %vm385_vm9 = vcmp.eq.s32.totalorder %v384_v47, 1 }
 0xa16   :  { %v371_v44 = vpop.permute.xlu1 %370 }
 0xa17   :  { %v373_v45 = vadd.f32 %v371_v44, %v363_v43 }
 0xa19   :  { %896 = vtanh.f32 %v373_v45  ;;  %v387_v7 = vsel %vm385_vm9, %v373_v45, %v304_v42  ;;  %v761_v42 = vld [vmem:[%s1125_s2 + $0x18] sm:$0xff]  }
 0xa1a   :  { %v556_v43 = vunpack.c.l.bf16 %v761_v42 }
 0xa23   :  { %v897_v46 = vpop.eup %896 }
 0xa24   :  { %376 = vrot.lane.b32.xlu1 %v897_v46, %s934_s21 }
 0xa96   :  { %v377_v48 = vpop.permute.xlu1 %376 }
 0xa97   :  { %v379_v49 = vmul.f32 %v895_v39, %v377_v48 }
 0xa99   :  { %v386_v50 = vsel %vm385_vm9, %v379_v49, %v303_v25 }
 0xa9a   :  { %v391_v51 = vpack.c.bf16 %v386_v50, %v386_v50 }
 0xa9c   :  { %393 = vrot.lane.b32.xlu0 %v391_v51, %s935_s22 }
 0xb0e   :  { %v394_v52 = vpop.permute.xlu0 %393 }
 0xb0f   :  { %828 = vmatmul.mubr.msk.bf16.vlgmr.msra.gmra.mrb[8].mxu0 %vm21_vm0, %v394_v52 }
 0xb10   :  { %840 = vmatpush3.bf16.msra.mxu0 %v970_v1  ;;  %843 = vmatprep.mubr.msk.bf16.mxu0 %vm932_vm1, %v931_v2 }
 0xb11   :  { %841 = vmatprep.subr.bf16.mxu0 %v931_v2 }
 0xb14   :  { %842 = vmatpush3.bf16.msra.mxu0 %v978_v3 }
 0xbe2   :  { %v432_v55 = vpop.f32.mrb[8].mxu0 }
 0xbe3   :  { %v438_v56 = vadd.f32 %v432_v55, %v390_v54  ;;  %v829_v57 = vpop.f32.mrb[9].mxu0 }
 0xbe4   :  { %v435_v58 = vpop.f32.mrb[10].mxu0 }
 0xbe5   :  { %898 = vtanh.f32 %v438_v56  ;;  %v830_v59 = vpop.f32.mrb[11].mxu0  ;;  %v757_v62 = vmul.f32 -1.442695, %v438_v56 }
 0xbe7   :  { %900 = vpow2.f32 %v757_v62 }
 0xbef   :  { %v899_v60 = vpop.eup %898 }
 0xbf0   :  { %448 = vrot.lane.b32.xlu1 %v899_v60, %s934_s21 }
 0xbf1   :  { %v901_v63 = vpop.eup %900 }
 0xbf2   :  { %v442_v0 = vadd.f32 1.0, %v901_v63 }
 0xbf4   :  { %466 = vperm.xlu1 %862, %v464_v61   ;;  %902 = vrcp.f32 %v442_v0 }
 0xbfe   :  { %v903_v4 = vpop.eup %902 }
 0xbff   :  { %v446_v8 = vmul.f32 %v903_v4, %v387_v7 }
 0xc62   :  { %v449_v5 = vpop.permute.xlu1 %448 }
 0xc63   :  { %v451_v6 = vmul.f32 %v903_v4, %v449_v5 }
 0xc65   :  { %453 = vrot.lane.b32.xlu0 %v451_v6, %s935_s22 }
 0xc73   :  { %v467_v12 = vpop.permute.xlu1 %466 }
 0xc74   :  { %vm468_vm11 = vcmp.eq.s32.totalorder %v467_v12, 1 }
 0xcd7   :  { %v454_v9 = vpop.permute.xlu0 %453 }
 0xcd8   :  { %v456_v10 = vadd.f32 %v454_v9, %v446_v8 }
 0xcda   :  { %904 = vtanh.f32 %v456_v10  ;;  %v470_v31 = vsel %vm468_vm11, %v456_v10, %v387_v7  ;;  %v639_v7 = vunpack.c.h.bf16 %v761_v42 }
 0xce4   :  { %v905_v11 = vpop.eup %904 }
 0xce5   :  { %459 = vrot.lane.b32.xlu0 %v905_v11, %s934_s21 }
 0xd57   :  { %v460_v14 = vpop.permute.xlu0 %459 }
 0xd58   :  { %v462_v15 = vmul.f32 %v903_v4, %v460_v14 }
 0xd5a   :  { %v469_v16 = vsel %vm468_vm11, %v462_v15, %v386_v50  ;;  %v630_v50 = vsel %vm629_vm14, 1, %v933_v13 }
 0xd5b   :  { %v474_v17 = vpack.c.bf16 %v469_v16, %v469_v16 }
 0xd5d   :  { %476 = vrot.lane.b32.xlu1 %v474_v17, %s935_s22 }
 0xdcf   :  { %v477_v18 = vpop.permute.xlu1 %476 }
 0xdd0   :  { %836 = vmatmul.mubr.msk.bf16.vlgmr.msra.gmra.mrb[8].mxu1 %vm21_vm0, %v477_v18 }
 0xdd1   :  { %848 = vmatpush3.bf16.msra.mxu1 %v970_v1  ;;  %851 = vmatprep.mubr.msk.bf16.mxu1 %vm932_vm1, %v931_v2  ;;  %v547_v1 = vsel %vm546_vm12, 1, %v933_v13  ;;  %vm712_vm1 = vcmp.gt.s32.totalorder %v1008_v19, 7 }
 0xdd2   :  { %849 = vmatprep.subr.bf16.mxu1 %v931_v2  ;;  %v713_v15 = vsel %vm712_vm1, 1, %v933_v13 }
 0xdd5   :  { %850 = vmatpush3.bf16.msra.mxu1 %v978_v3 }
 0xea3   :  { %v515_v21 = vpop.f32.mrb[8].mxu1 }
 0xea4   :  { %v521_v22 = vadd.f32 %v515_v21, %v473_v20  ;;  %v837_v23 = vpop.f32.mrb[9].mxu1 }
 0xea5   :  { %v518_v24 = vpop.f32.mrb[10].mxu1 }
 0xea6   :  { %906 = vtanh.f32 %v521_v22  ;;  %v838_v25 = vpop.f32.mrb[11].mxu1  ;;  %v760_v27 = vmul.f32 -1.442695, %v521_v22 }
 0xea8   :  { %908 = vpow2.f32 %v760_v27 }
 0xeb0   :  { %v907_v26 = vpop.eup %906 }
 0xeb1   :  { %531 = vrot.lane.b32.xlu0 %v907_v26, %s934_s21 }
 0xeb2   :  { %v909_v2 = vpop.eup %908 }
 0xeb3   :  { %v525_v28 = vadd.f32 1.0, %v909_v2 }
 0xeb5   :  { %549 = vperm.xlu0 %863, %v547_v1   ;;  %910 = vrcp.f32 %v525_v28 }
 0xebf   :  { %v911_v3 = vpop.eup %910 }
 0xec0   :  { %v529_v32 = vmul.f32 %v911_v3, %v470_v31 }
 0xf23   :  { %v532_v29 = vpop.permute.xlu0 %531 }
 0xf24   :  { %v534_v30 = vmul.f32 %v911_v3, %v532_v29 }
 0xf26   :  { %536 = vrot.lane.b32.xlu1 %v534_v30, %s935_s22 }
 0xf34   :  { %v550_v36 = vpop.permute.xlu0 %549 }
 0xf35   :  { %vm551_vm13 = vcmp.eq.s32.totalorder %v550_v36, 1 }
 0xf98   :  { %v537_v33 = vpop.permute.xlu1 %536 }
 0xf99   :  { %v539_v34 = vadd.f32 %v537_v33, %v529_v32 }
 0xf9b   :  { %912 = vtanh.f32 %v539_v34  ;;  %v553_v57 = vsel %vm551_vm13, %v539_v34, %v470_v31 }
 0xfa5   :  { %v913_v35 = vpop.eup %912 }
 0xfa6   :  { %542 = vrot.lane.b32.xlu1 %v913_v35, %s934_s21 }
0x1018   :  { %v543_v37 = vpop.permute.xlu1 %542 }
0x1019   :  { %v545_v38 = vmul.f32 %v911_v3, %v543_v37 }
0x101b   :  { %v552_v39 = vsel %vm551_vm13, %v545_v38, %v469_v16 }
0x101c   :  { %v557_v40 = vpack.c.bf16 %v552_v39, %v552_v39 }
0x101e   :  { %559 = vrot.lane.b32.xlu0 %v557_v40, %s935_s22 }
0x1090   :  { %v560_v41 = vpop.permute.xlu0 %559 }
0x1091   :  { %844 = vmatmul.mubr.msk.bf16.vlgmr.msra.gmra.mrb[12].mxu0 %vm21_vm0, %v560_v41 }
0x1164   :  { %v598_v44 = vpop.f32.mrb[12].mxu0 }
0x1165   :  { %v604_v45 = vadd.f32 %v598_v44, %v556_v43  ;;  %v845_v46 = vpop.f32.mrb[13].mxu0 }
0x1166   :  { %v601_v47 = vpop.f32.mrb[14].mxu0 }
0x1167   :  { %914 = vtanh.f32 %v604_v45  ;;  %v846_v48 = vpop.f32.mrb[15].mxu0  ;;  %v763_v51 = vmul.f32 -1.442695, %v604_v45 }
0x1169   :  { %916 = vpow2.f32 %v763_v51 }
0x1171   :  { %v915_v49 = vpop.eup %914 }
0x1172   :  { %614 = vrot.lane.b32.xlu1 %v915_v49, %s934_s21 }
0x1173   :  { %v917_v52 = vpop.eup %916 }
0x1174   :  { %v608_v53 = vadd.f32 1.0, %v917_v52 }
0x1176   :  { %632 = vperm.xlu1 %862, %v630_v50   ;;  %918 = vrcp.f32 %v608_v53 }
0x1180   :  { %v919_v54 = vpop.eup %918 }
0x1181   :  { %v612_v58 = vmul.f32 %v919_v54, %v553_v57 }
0x11e4   :  { %v615_v55 = vpop.permute.xlu1 %614 }
0x11e5   :  { %v617_v56 = vmul.f32 %v919_v54, %v615_v55 }
0x11e7   :  { %619 = vrot.lane.b32.xlu0 %v617_v56, %s935_s22 }
0x11f5   :  { %v633_v62 = vpop.permute.xlu1 %632 }
0x11f6   :  { %vm634_vm15 = vcmp.eq.s32.totalorder %v633_v62, 1 }
0x1259   :  { %v620_v59 = vpop.permute.xlu0 %619 }
0x125a   :  { %v622_v60 = vadd.f32 %v620_v59, %v612_v58 }
0x125c   :  { %920 = vtanh.f32 %v622_v60  ;;  %v636_v23 = vsel %vm634_vm15, %v622_v60, %v553_v57 }
0x1266   :  { %v921_v61 = vpop.eup %920 }
0x1267   :  { %625 = vrot.lane.b32.xlu0 %v921_v61, %s934_s21 }
0x12d9   :  { %v626_v63 = vpop.permute.xlu0 %625 }
0x12da   :  { %v628_v0 = vmul.f32 %v919_v54, %v626_v63 }
0x12dc   :  { %v635_v4 = vsel %vm634_vm15, %v628_v0, %v552_v39 }
0x12dd   :  { %v640_v5 = vpack.c.bf16 %v635_v4, %v635_v4 }
0x12df   :  { %642 = vrot.lane.b32.xlu1 %v640_v5, %s935_s22 }
0x1351   :  { %v643_v6 = vpop.permute.xlu1 %642 }
0x1352   :  { %852 = vmatmul.mubr.msk.bf16.vlgmr.msra.gmra.mrb[12].mxu1 %vm21_vm0, %v643_v6 }
0x1425   :  { %v681_v8 = vpop.f32.mrb[12].mxu1 }
0x1426   :  { %v687_v9 = vadd.f32 %v681_v8, %v639_v7  ;;  %v853_v10 = vpop.f32.mrb[13].mxu1 }
0x1427   :  { %v684_v11 = vpop.f32.mrb[14].mxu1 }
0x1428   :  { %922 = vtanh.f32 %v687_v9  ;;  %v854_v12 = vpop.f32.mrb[15].mxu1  ;;  %v766_v16 = vmul.f32 -1.442695, %v687_v9 }
0x142a   :  { %924 = vpow2.f32 %v766_v16 }
0x1432   :  { %v923_v14 = vpop.eup %922 }
0x1433   :  { %697 = vrot.lane.b32.xlu0 %v923_v14, %s934_s21 }
0x1434   :  { %v925_v17 = vpop.eup %924 }
0x1435   :  { %v691_v18 = vadd.f32 1.0, %v925_v17 }
0x1437   :  { %715 = vperm.xlu0 %863, %v713_v15   ;;  %926 = vrcp.f32 %v691_v18 }
0x1441   :  { %v927_v20 = vpop.eup %926 }
0x1442   :  { %v695_v24 = vmul.f32 %v927_v20, %v636_v23 }
0x14a5   :  { %v698_v21 = vpop.permute.xlu0 %697 }
0x14a6   :  { %v700_v22 = vmul.f32 %v927_v20, %v698_v21 }
0x14a8   :  { %702 = vrot.lane.b32.xlu1 %v700_v22, %s935_s22 }
0x14b6   :  { %v716_v1 = vpop.permute.xlu0 %715 }
0x14b7   :  { %vm717_vm2 = vcmp.eq.s32.totalorder %v716_v1, 1 }
0x151a   :  { %v703_v19 = vpop.permute.xlu1 %702 }
0x151b   :  { %v705_v25 = vadd.f32 %v703_v19, %v695_v24 }
0x151d   :  { %928 = vtanh.f32 %v705_v25  ;;  %v719_v13 = vsel %vm717_vm2, %v705_v25, %v636_v23 }
0x1527   :  { %v929_v26 = vpop.eup %928 }
0x1528   :  { %708 = vrot.lane.b32.xlu1 %v929_v26, %s934_s21 }
0x152c   :  { %726 = vrot.lane.b32.xlu1 %v719_v13, %s936_s25 }
0x159a   :  { %v709_v27 = vpop.permute.xlu1 %708 }
0x159b   :  { %v711_v2 = vmul.f32 %v927_v20, %v709_v27 }
0x159d   :  { %v718_v28 = vsel %vm717_vm2, %v711_v2, %v635_v4 }
0x159e   :  { %721 = vrot.lane.b32.xlu0 %v718_v28, %s935_s22  ;;  %v727_v3 = vpop.permute.xlu1 %726 }
0x159f   :  { %729 = vst.msk [vmem:[#allocation3] sm:$0xff] %vm21_vm0, %v727_v3 }
0x1610   :  { %v722_v29 = vpop.permute.xlu0 %721 }
0x1611   :  { %724 = vst.msk [vmem:[#allocation2] sm:$0xff] %vm21_vm0, %v722_v29 }
0x1612 PF:  {}
0x1618   :  { %v733_v30 = vld [vmem:[#allocation2] sm:$0xff] }
0x1619   :  { %735 = vst.msk [vmem:[%s1127_s4] sm:$0xff] %vm21_vm0, %v733_v30 }

</bundles_post_ra>
